<compile_context>
chip_gen: v7x
topology: tpu7x:2x2x1
jax: 0.10.0
libtpu: 0.0.40
codegen_flags: <defaults>
</compile_context>

<pallas_src>
import functools

import jax
import jax.numpy as jnp
from jax.experimental import pallas as pl
from jax.experimental.pallas import tpu as pltpu


LANES = 128
MAX_TILE_ROWS = 4096   # 4096 x 128 x f32 = 2 MiB per input tile
NUM_SLICES = 2         # leading "parallel" grid axis (both TCs on v7x)


def _round_up(a, b):
    return (a + b - 1) // b * b


def _dice_partial_kernel(x_ref, t_ref, inter_ref, xsum_ref, tsum_ref, *,
                         rows_total, tile_rows, tiles_per_slice, needs_mask):
    p = pl.program_id(0)   # parallel slice
    k = pl.program_id(1)   # sequential reduction step

    @pl.when(k == 0)
    def _():
        inter_ref[...] = jnp.zeros_like(inter_ref)
        xsum_ref[...] = jnp.zeros_like(xsum_ref)
        tsum_ref[...] = jnp.zeros_like(tsum_ref)

    # Cast in-kernel (inputs stream through HBM in their native dtype).
    x = x_ref[...].astype(jnp.float32)
    t = t_ref[...].astype(jnp.float32)

    if needs_mask:
        # Zero out rows past the real end of the data (ragged last tile and
        # any clamped overrun tiles of the last slice).
        row_start = (p * tiles_per_slice + k) * tile_rows
        row_ids = row_start + jax.lax.broadcasted_iota(
            jnp.int32, (tile_rows, 1), 0)
        valid = row_ids < rows_total
        x = jnp.where(valid, x, 0.0)
        t = jnp.where(valid, t, 0.0)

    def fold(v):
        # (tile_rows, 128) -> (tile_rows//8, 8, 128) -> (8, 128)
        # Layout-compatible reshape; the reduction over the leading axis is
        # plain vreg+vreg VPU adds (no per-step cross-lane XLU reduce).
        return v.reshape(tile_rows // 8, 8, LANES).sum(axis=0)

    inter_ref[0] += fold(x * t)
    xsum_ref[0] += fold(x)
    tsum_ref[0] += fold(t)


def dice_loss(inputs, targets, smooth=1.0):
    """Pallas TPU DiceLoss. Returns a scalar float32."""
    x = inputs.reshape(-1)
    t = targets.reshape(-1)
    n = x.shape[0]

    # Only pad when the flattened length is not a multiple of 128 lanes
    # (<= 127 zeros; zero padding is neutral for all three sums).
    n_lane = _round_up(n, LANES)
    if n_lane != n:
        x = jnp.pad(x, (0, n_lane - n))
        t = jnp.pad(t, (0, n_lane - n))
    rows = n_lane // LANES
    x2 = x.reshape(rows, LANES)
    t2 = t.reshape(rows, LANES)

    tile_rows = min(MAX_TILE_ROWS, _round_up(rows, 8))
    tiles_total = pl.cdiv(rows, tile_rows)
    slices = NUM_SLICES if tiles_total >= NUM_SLICES else 1
    tiles_per_slice = pl.cdiv(tiles_total, slices)
    # Mask is only compiled in when the rectangular grid over-covers the rows.
    needs_mask = slices * tiles_per_slice * tile_rows != rows

    def tile_index(p, k):
        # Clamp so rare overrun tiles of the last slice re-read a valid block;
        # their contribution is zeroed by the in-kernel row mask.
        return (jnp.minimum(p * tiles_per_slice + k, tiles_total - 1), 0)

    kernel = functools.partial(
        _dice_partial_kernel,
        rows_total=rows,
        tile_rows=tile_rows,
        tiles_per_slice=tiles_per_slice,
        needs_mask=needs_mask,
    )

    part_shape = jax.ShapeDtypeStruct((slices, 8, LANES), jnp.float32)
    part_spec = pl.BlockSpec((1, 8, LANES), lambda p, k: (p, 0, 0))

    inter_p, xsum_p, tsum_p = pl.pallas_call(
        kernel,
        out_shape=(part_shape, part_shape, part_shape),
        grid_spec=pltpu.PrefetchScalarGridSpec(
            num_scalar_prefetch=0,
            grid=(slices, tiles_per_slice),
            in_specs=[
                pl.BlockSpec((tile_rows, LANES), tile_index),
                pl.BlockSpec((tile_rows, LANES), tile_index),
            ],
            out_specs=(part_spec, part_spec, part_spec),
        ),
        compiler_params=pltpu.CompilerParams(
            dimension_semantics=("parallel", "arbitrary")),
    )(x2, t2)

    # Tiny final reduce (3 * slices * 8 * 128 floats) + dice math in the
    # wrapper; `smooth` is never baked into the kernel -> no recompiles.
    intersection = jnp.sum(inter_p)
    x_sum = jnp.sum(xsum_p)
    t_sum = jnp.sum(tsum_p)
    dice = (2.0 * intersection + smooth) / (x_sum + t_sum + smooth)
    return (1.0 - dice).astype(jnp.float32)


if __name__ == "__main__":
    key = jax.random.PRNGKey(0)
    k1, k2 = jax.random.split(key)
    # small shapes consistent with a segmentation head (NCHW-style tensor)
    inputs = jax.nn.sigmoid(jax.random.normal(k1, (2, 4, 16, 16), jnp.float32))
    targets = (jax.random.uniform(k2, (2, 4, 16, 16)) > 0.5).astype(jnp.float32)

    loss = dice_loss(inputs, targets, smooth=1)
    jax.block_until_ready(loss)

    # pure-JAX reference check
    xf = inputs.reshape(-1)
    tf = targets.reshape(-1)
    inter = jnp.sum(xf * tf)
    ref = 1.0 - (2.0 * inter + 1.0) / (jnp.sum(xf) + jnp.sum(tf) + 1.0)
    assert jnp.allclose(loss, ref, atol=1e-5, rtol=1e-5), (loss, ref)

    print("KERNEL_OK")
</pallas_src>

<mosaic_0001>
module attributes {stable_mosaic.version = 11 : i64} {
  func.func @_dice_partial_kernel(%arg0: i32, %arg1: i32, %arg2: memref<16x128xf32, #tpu.memory_space<vmem>>, %arg3: memref<16x128xf32, #tpu.memory_space<vmem>>, %arg4: memref<1x8x128xf32, #tpu.memory_space<vmem>>, %arg5: memref<1x8x128xf32, #tpu.memory_space<vmem>>, %arg6: memref<1x8x128xf32, #tpu.memory_space<vmem>>) attributes {dimension_semantics = [#tpu.dimension_semantics<parallel>, #tpu.dimension_semantics<arbitrary>], iteration_bounds = array<i64: 1, 1>, scalar_prefetch = 0 : i64, scratch_operands = 0 : i64, tpu.core_type = #tpu.core_type<tc>, window_params = [{transform_indices = @transform_0, window_bounds = array<i64: 16, 128>}, {transform_indices = @transform_1, window_bounds = array<i64: 16, 128>}, {transform_indices = @transform_2, window_bounds = array<i64: 1, 8, 128>}, {transform_indices = @transform_3, window_bounds = array<i64: 1, 8, 128>}, {transform_indices = @transform_4, window_bounds = array<i64: 1, 8, 128>}]} {
    %c0_i32 = arith.constant 0 : i32
    %0 = arith.cmpi eq, %arg1, %c0_i32 : i32
    %1 = arith.extui %0 : i1 to i32
    %c0_i32_0 = arith.constant 0 : i32
    %2 = arith.cmpi ne, %1, %c0_i32_0 : i32
    scf.if %2 {
      %cst_24 = arith.constant 0.000000e+00 : f32
      %30 = vector.broadcast %cst_24 : f32 to vector<1x8x128xf32>
      %c0_25 = arith.constant 0 : index
      %c0_26 = arith.constant 0 : index
      %c0_27 = arith.constant 0 : index
      %31 = vector.load %arg4[%c0_25, %c0_26, %c0_27] : memref<1x8x128xf32, #tpu.memory_space<vmem>>, vector<1x8x128xf32>
      tpu.vector_store %arg4[%c0_25, %c0_26, %c0_27], %30 {strides = array<i32>} : memref<1x8x128xf32, #tpu.memory_space<vmem>>, vector<1x8x128xf32>,
      %cst_28 = arith.constant 0.000000e+00 : f32
      %32 = vector.broadcast %cst_28 : f32 to vector<1x8x128xf32>
      %c0_29 = arith.constant 0 : index
      %c0_30 = arith.constant 0 : index
      %c0_31 = arith.constant 0 : index
      %33 = vector.load %arg5[%c0_29, %c0_30, %c0_31] : memref<1x8x128xf32, #tpu.memory_space<vmem>>, vector<1x8x128xf32>
      tpu.vector_store %arg5[%c0_29, %c0_30, %c0_31], %32 {strides = array<i32>} : memref<1x8x128xf32, #tpu.memory_space<vmem>>, vector<1x8x128xf32>,
      %cst_32 = arith.constant 0.000000e+00 : f32
      %34 = vector.broadcast %cst_32 : f32 to vector<1x8x128xf32>
      %c0_33 = arith.constant 0 : index
      %c0_34 = arith.constant 0 : index
      %c0_35 = arith.constant 0 : index
      %35 = vector.load %arg6[%c0_33, %c0_34, %c0_35] : memref<1x8x128xf32, #tpu.memory_space<vmem>>, vector<1x8x128xf32>
      tpu.vector_store %arg6[%c0_33, %c0_34, %c0_35], %34 {strides = array<i32>} : memref<1x8x128xf32, #tpu.memory_space<vmem>>, vector<1x8x128xf32>,
    } else {
    }
    %c0 = arith.constant 0 : index
    %c0_1 = arith.constant 0 : index
    %3 = vector.load %arg2[%c0, %c0_1] : memref<16x128xf32, #tpu.memory_space<vmem>>, vector<16x128xf32>
    %c0_2 = arith.constant 0 : index
    %c0_3 = arith.constant 0 : index
    %4 = vector.load %arg3[%c0_2, %c0_3] : memref<16x128xf32, #tpu.memory_space<vmem>>, vector<16x128xf32>
    %c0_4 = arith.constant 0 : index
    %c0_5 = arith.constant 0 : index
    %c0_6 = arith.constant 0 : index
    %5 = vector.load %arg4[%c0_4, %c0_5, %c0_6] : memref<1x8x128xf32, #tpu.memory_space<vmem>>, vector<1x8x128xf32>
    %6 = vector.shape_cast %5 : vector<1x8x128xf32> to vector<8x128xf32>
    %7 = arith.mulf %3, %4 : vector<16x128xf32>
    %8 = vector.shape_cast %7 : vector<16x128xf32> to vector<2x8x128xf32>
    %cst = arith.constant dense<0.000000e+00> : vector<8x128xf32>
    %9 = vector.multi_reduction <add>, %8, %cst [0] : vector<2x8x128xf32> to vector<8x128xf32>
    %10 = arith.addf %6, %9 : vector<8x128xf32>
    %c0_7 = arith.constant 0 : index
    %c0_8 = arith.constant 0 : index
    %c0_9 = arith.constant 0 : index
    %11 = vector.load %arg4[%c0_7, %c0_8, %c0_9] : memref<1x8x128xf32, #tpu.memory_space<vmem>>, vector<1x8x128xf32>
    %12 = vector.shape_cast %11 : vector<1x8x128xf32> to vector<8x128xf32>
    %13 = vector.shape_cast %10 : vector<8x128xf32> to vector<1x8x128xf32>
    tpu.vector_store %arg4[%c0_7, %c0_8, %c0_9], %13 {strides = array<i32>} : memref<1x8x128xf32, #tpu.memory_space<vmem>>, vector<1x8x128xf32>,
    %c0_10 = arith.constant 0 : index
    %c0_11 = arith.constant 0 : index
    %c0_12 = arith.constant 0 : index
    %14 = vector.load %arg5[%c0_10, %c0_11, %c0_12] : memref<1x8x128xf32, #tpu.memory_space<vmem>>, vector<1x8x128xf32>
    %15 = vector.shape_cast %14 : vector<1x8x128xf32> to vector<8x128xf32>
    %16 = vector.shape_cast %3 : vector<16x128xf32> to vector<2x8x128xf32>
    %cst_13 = arith.constant dense<0.000000e+00> : vector<8x128xf32>
    %17 = vector.multi_reduction <add>, %16, %cst_13 [0] : vector<2x8x128xf32> to vector<8x128xf32>
    %18 = arith.addf %15, %17 : vector<8x128xf32>
    %c0_14 = arith.constant 0 : index
    %c0_15 = arith.constant 0 : index
    %c0_16 = arith.constant 0 : index
    %19 = vector.load %arg5[%c0_14, %c0_15, %c0_16] : memref<1x8x128xf32, #tpu.memory_space<vmem>>, vector<1x8x128xf32>
    %20 = vector.shape_cast %19 : vector<1x8x128xf32> to vector<8x128xf32>
    %21 = vector.shape_cast %18 : vector<8x128xf32> to vector<1x8x128xf32>
    tpu.vector_store %arg5[%c0_14, %c0_15, %c0_16], %21 {strides = array<i32>} : memref<1x8x128xf32, #tpu.memory_space<vmem>>, vector<1x8x128xf32>,
    %c0_17 = arith.constant 0 : index
    %c0_18 = arith.constant 0 : index
    %c0_19 = arith.constant 0 : index
    %22 = vector.load %arg6[%c0_17, %c0_18, %c0_19] : memref<1x8x128xf32, #tpu.memory_space<vmem>>, vector<1x8x128xf32>
    %23 = vector.shape_cast %22 : vector<1x8x128xf32> to vector<8x128xf32>
    %24 = vector.shape_cast %4 : vector<16x128xf32> to vector<2x8x128xf32>
    %cst_20 = arith.constant dense<0.000000e+00> : vector<8x128xf32>
    %25 = vector.multi_reduction <add>, %24, %cst_20 [0] : vector<2x8x128xf32> to vector<8x128xf32>
    %26 = arith.addf %23, %25 : vector<8x128xf32>
    %c0_21 = arith.constant 0 : index
    %c0_22 = arith.constant 0 : index
    %c0_23 = arith.constant 0 : index
    %27 = vector.load %arg6[%c0_21, %c0_22, %c0_23] : memref<1x8x128xf32, #tpu.memory_space<vmem>>, vector<1x8x128xf32>
    %28 = vector.shape_cast %27 : vector<1x8x128xf32> to vector<8x128xf32>
    %29 = vector.shape_cast %26 : vector<8x128xf32> to vector<1x8x128xf32>
    tpu.vector_store %arg6[%c0_21, %c0_22, %c0_23], %29 {strides = array<i32>} : memref<1x8x128xf32, #tpu.memory_space<vmem>>, vector<1x8x128xf32>,
    return
  }
  func.func @transform_0(%arg0: i32, %arg1: i32) -> (i32, i32) {
    %c1_i32 = arith.constant 1 : i32
    %0 = arith.muli %arg0, %c1_i32 : i32
    %1 = arith.addi %0, %arg1 : i32
    %c0_i32 = arith.constant 0 : i32
    %2 = arith.minsi %1, %c0_i32 : i32
    %c0_i32_0 = arith.constant 0 : i32
    %c0_i32_1 = arith.constant 0 : i32
    return %2, %c0_i32_0 : i32, i32
  }
  func.func @transform_1(%arg0: i32, %arg1: i32) -> (i32, i32) {
    %c1_i32 = arith.constant 1 : i32
    %0 = arith.muli %arg0, %c1_i32 : i32
    %1 = arith.addi %0, %arg1 : i32
    %c0_i32 = arith.constant 0 : i32
    %2 = arith.minsi %1, %c0_i32 : i32
    %c0_i32_0 = arith.constant 0 : i32
    %c0_i32_1 = arith.constant 0 : i32
    return %2, %c0_i32_0 : i32, i32
  }
  func.func @transform_2(%arg0: i32, %arg1: i32) -> (i32, i32, i32) {
    %c0_i32 = arith.constant 0 : i32
    %c0_i32_0 = arith.constant 0 : i32
    %c0_i32_1 = arith.constant 0 : i32
    return %arg0, %c0_i32, %c0_i32_0 : i32, i32, i32
  }
  func.func @transform_3(%arg0: i32, %arg1: i32) -> (i32, i32, i32) {
    %c0_i32 = arith.constant 0 : i32
    %c0_i32_0 = arith.constant 0 : i32
    %c0_i32_1 = arith.constant 0 : i32
    return %arg0, %c0_i32, %c0_i32_0 : i32, i32, i32
  }
  func.func @transform_4(%arg0: i32, %arg1: i32) -> (i32, i32, i32) {
    %c0_i32 = arith.constant 0 : i32
    %c0_i32_0 = arith.constant 0 : i32
    %c0_i32_1 = arith.constant 0 : i32
    return %arg0, %c0_i32, %c0_i32_0 : i32, i32, i32
  }
}

</mosaic_0001>

<bundles_post_ra>
// kernel: tpu_custom_call.1
= control target key start
LH: loop header
LB: loop body
LE: loop exit
PB: predicated region body
PF: predicated region fallthrough
CT: control target
= control target key end

     0   :  { %10 = vsyncpa [#allocation3], 0  ;;  %s368_s0 = inlined_call_operand.hbm [shape: f32[16,128], index: 0, kind: input, shape index: {}]   ;;  %s369_s1 = inlined_call_operand.hbm [shape: f32[16,128], index: 1, kind: input, shape index: {}]   ;;  %s370_s2 = inlined_call_operand.hbm [shape: f32[1,8,128], index: 2, kind: output, shape index: {0}]   ;;  %s371_s3 = inlined_call_operand.hbm [shape: f32[1,8,128], index: 3, kind: output, shape index: {1}]   ;;  %s372_s4 = inlined_call_operand.hbm [shape: f32[1,8,128], index: 4, kind: output, shape index: {2}]  }
   0x1   :  { %11 = vsyncpa [#allocation6], 0 }
   0x2   :  { %12 = vsyncpa [#allocation4], 0 }
   0x3   :  { %13 = vsyncpa [#allocation9], 0  ;;  %s262_s15 = smov [#allocation2]   ;;  %s144_s19 = scalar_lea.hbm %s368_s0, 256 }
   0x4   :  { %s25_s16 = sshll.u32 %s262_s15, 4  ;;  %p145_p0 = scmp.ne.s32.totalorder %s368_s0, %s144_s19  ;;  %s26_s16 = int_to_ptr.vmem [resolvable:$true] %s25_s16 }
   0x5   :  { %p148_p1 = scmp.lt.u32.totalorder %s144_s19, %s368_s0 }
   0x7   :  { %p150_p2 = pnand %p148_p1, %p145_p0 }
   0x9   :  { %153 = shalt.err (!%p150_p2)
}
   0xa   :  { %s154_s24 = scalar_lea.vmem %s26_s16, 256  ;;  %p159_p4 = scmp.lt.s32.totalorder %s26_s16, %s26_s16 }
   0xb   :  { %p155_p3 = scmp.ne.s32.totalorder %s26_s16, %s154_s24  ;;  %p160_p5 = scmp.lt.s32.totalorder %s154_s24, %s154_s24 }
   0xd   :  { %p161_p6 = por %p160_p5, %p159_p4 }
   0xf   :  { %p162_p7 = pnand %p161_p6, %p155_p3 }
  0x11   :  { %165 = shalt.err (!%p162_p7)
}
  0x12   :  { %s263_s25 = smov 128   ;;  %s264_s26 = smov 8  }
  0x13   :  { %31 = dma.hbm_to_vmem [thread:$0]  %s368_s0, 256, %s26_s16, [#allocation3], %s263_s25, %s263_s25, %s264_s26  }
  0x14   :  { %s265_s29 = smov [#allocation5]   ;;  %s166_s7 = scalar_lea.hbm %s369_s1, 256 }
  0x15   :  { %s43_s30 = sshll.u32 %s265_s29, 4  ;;  %p167_p8 = scmp.ne.s32.totalorder %s369_s1, %s166_s7  ;;  %s44_s30 = int_to_ptr.vmem [resolvable:$true] %s43_s30 }
  0x16   :  { %p170_p9 = scmp.lt.u32.totalorder %s166_s7, %s369_s1 }
  0x18   :  { %p172_p10 = pnand %p170_p9, %p167_p8 }
  0x1a   :  { %175 = shalt.err (!%p172_p10)
}
  0x1b   :  { %s176_s12 = scalar_lea.vmem %s44_s30, 256  ;;  %p181_p12 = scmp.lt.s32.totalorder %s44_s30, %s44_s30 }
  0x1c   :  { %p177_p11 = scmp.ne.s32.totalorder %s44_s30, %s176_s12  ;;  %p182_p13 = scmp.lt.s32.totalorder %s176_s12, %s176_s12 }
  0x1e   :  { %p183_p0 = por %p182_p13, %p181_p12 }
  0x20   :  { %p184_p1 = pnand %p183_p0, %p177_p11 }
  0x22   :  { %187 = shalt.err (!%p184_p1)
}
  0x23   :  { %49 = dma.hbm_to_vmem [thread:$0]  %s369_s1, 256, %s44_s30, [#allocation6], %s263_s25, %s263_s25, %s264_s26  }
  0x24   :  { %254 = dma.done.wait [#allocation3], 256  }
  0x25   :  { %255 = vsyncadd [#allocation3], 4294967040 }
  0x26   :  { %256 = dma.done.wait [#allocation6], 256  }
  0x27   :  { %257 = vsyncadd [#allocation6], 4294967040  ;;  %v71_v0 = vld [vmem:[#allocation2] sm:$0xff]  ;;  %v72_v1 = vld [vmem:[#allocation2 + $0x8] sm:$0xff]  ;;  %s266_s14 = smov [#allocation8]   ;;  %s267_s16 = smov [#allocation10]  }
  0x28   :  { %v73_v2 = vld [vmem:[#allocation5] sm:$0xff]  ;;  %s105_s15 = sshll.u32 %s266_s14, 4  ;;  %v82_v3 = vadd.f32 %v72_v1, %v71_v0  ;;  %v74_v4 = vld [vmem:[#allocation5 + $0x8] sm:$0xff]  ;;  %s115_s17 = sshll.u32 %s267_s16, 4  ;;  %s106_s15 = int_to_ptr.vmem [resolvable:$true] %s105_s15  ;;  %s318_s17 = int_to_ptr.vmem [resolvable:$true] %s115_s17 }
  0x29   :  { %v76_v5 = vmul.f32 %v73_v2, %v71_v0  ;;  %v77_v6 = vmul.f32 %v74_v4, %v72_v1  ;;  %v86_v7 = vadd.f32 %v74_v4, %v73_v2  ;;  %s268_s18 = smov [#allocation7]   ;;  %s188_s1 = scalar_lea.vmem %s106_s15, 128 }
  0x2a   :  { %s95_s19 = sshll.u32 %s268_s18, 4  ;;  %84 = vst [vmem:[#allocation8] sm:$0xff] %v82_v3  ;;  %p189_p2 = scmp.ne.s32.totalorder %s106_s15, %s188_s1  ;;  %s320_s19 = int_to_ptr.vmem [resolvable:$true] %s95_s19 }
  0x2b   :  { %v78_v8 = vadd.f32 %v77_v6, %v76_v5  ;;  %88 = vst [vmem:[#allocation10] sm:$0xff] %v86_v7  ;;  %p193_p3 = scmp.lt.s32.totalorder %s106_s15, %s106_s15  ;;  %p194_p4 = scmp.lt.s32.totalorder %s188_s1, %s188_s1 }
  0x2d   :  { %p195_p5 = por %p194_p4, %p193_p3 }
  0x2f   :  { %p196_p6 = pnand %p195_p5, %p189_p2 }
  0x31   :  { %199 = shalt.err (!%p196_p6)
}
  0x32   :  { %s200_s22 = scalar_lea.hbm %s371_s3, 128 }
  0x33   :  { %p201_p7 = scmp.ne.s32.totalorder %s371_s3, %s200_s22  ;;  %p204_p8 = scmp.lt.u32.totalorder %s200_s22, %s371_s3 }
  0x35   :  { %p206_p9 = pnand %p204_p8, %p201_p7 }
  0x37   :  { %209 = shalt.err (!%p206_p9)
}
  0x38   :  { %108 = dma.vmem_to_hbm [thread:$0]  %s106_s15, 128, %s371_s3, [#allocation9]  }
  0x39   :  { %s210_s29 = scalar_lea.vmem %s318_s17, 128  ;;  %p215_p11 = scmp.lt.s32.totalorder %s318_s17, %s318_s17 }
  0x3a   :  { %p211_p10 = scmp.ne.s32.totalorder %s318_s17, %s210_s29  ;;  %p216_p12 = scmp.lt.s32.totalorder %s210_s29, %s210_s29 }
  0x3c   :  { %p217_p13 = por %p216_p12, %p215_p11 }
  0x3e   :  { %p218_p0 = pnand %p217_p13, %p211_p10 }
  0x40   :  { %221 = shalt.err (!%p218_p0)
}
  0x41   :  { %s222_s6 = scalar_lea.hbm %s372_s4, 128 }
  0x42   :  { %p223_p1 = scmp.ne.s32.totalorder %s372_s4, %s222_s6  ;;  %p226_p2 = scmp.lt.u32.totalorder %s222_s6, %s372_s4 }
  0x44   :  { %p228_p3 = pnand %p226_p2, %p223_p1 }
  0x46   :  { %231 = shalt.err (!%p228_p3)
}
  0x47   :  { %118 = dma.vmem_to_hbm [thread:$0]  %s318_s17, 128, %s372_s4, [#allocation9]   ;;  %80 = vst [vmem:[#allocation7] sm:$0xff] %v78_v8 }
  0x48   :  { %s232_s12 = scalar_lea.vmem %s320_s19, 128  ;;  %p237_p5 = scmp.lt.s32.totalorder %s320_s19, %s320_s19 }
  0x49   :  { %p233_p4 = scmp.ne.s32.totalorder %s320_s19, %s232_s12  ;;  %p238_p6 = scmp.lt.s32.totalorder %s232_s12, %s232_s12 }
  0x4b   :  { %p239_p7 = por %p238_p6, %p237_p5 }
  0x4d   :  { %p240_p8 = pnand %p239_p7, %p233_p4 }
  0x4f   :  { %243 = shalt.err (!%p240_p8)
}
  0x50   :  { %s244_s14 = scalar_lea.hbm %s370_s2, 128 }
  0x51   :  { %p245_p9 = scmp.ne.s32.totalorder %s370_s2, %s244_s14  ;;  %p248_p10 = scmp.lt.u32.totalorder %s244_s14, %s370_s2 }
  0x53   :  { %p250_p11 = pnand %p248_p10, %p245_p9 }
  0x55   :  { %253 = shalt.err (!%p250_p11)
}
  0x56   :  { %98 = dma.vmem_to_hbm [thread:$0]  %s320_s19, 128, %s370_s2, [#allocation4]  }
  0x57   :  { %258 = dma.done.wait [#allocation4], 128  }
  0x58   :  { %259 = vsyncadd [#allocation4], 4294967168 }
  0x59   :  { %260 = dma.done.wait [#allocation9], 256  }
  0x5a   :  { %261 = vsyncadd [#allocation9], 4294967040 }
  0x5b   :  { %128 = vsyncpa [#allocation3], 1 }
  0x5c   :  { %129 = vsyncpa [#allocation6], 1 }
  0x5d   :  { %130 = vsyncpa [#allocation4], 1 }
  0x5e   :  { %131 = vsyncpa [#allocation9], 1 }

</bundles_post_ra>
